<compile_context>
chip_gen: v6e
topology: v6e:2x2x1
jax: 0.10.0
libtpu: 0.0.40
codegen_flags: <defaults>
</compile_context>

<pallas_src>
import functools
import math

import jax
import jax.numpy as jnp
from jax.experimental import pallas as pl
from jax.experimental.pallas import tpu as pltpu


def _round_up(x, m):
    return ((x + m - 1) // m) * m


def _detect_tpu():
    """Return (physical VMEM bytes, TensorCores per chip) with safe fallbacks."""
    vmem_bytes = 64 << 20          # conservative default (v7x physical VMEM)
    n_tc = 1                       # v5e / v6e: single TensorCore per chip
    try:
        info = pltpu.get_tpu_info()
        vmem_bytes = int(getattr(info, "vmem_capacity_bytes", vmem_bytes))
    except Exception:
        pass
    try:
        kind = jax.devices()[0].device_kind.lower()
        if "v7" in kind or "tpu7" in kind or "7x" in kind:
            n_tc = 2               # v7x: 2 TensorCores per chip
    except Exception:
        pass
    return vmem_bytes, n_tc


def _soft_f1_partial_kernel(prob_ref, tgt_ref, acc_ref, *,
                            valid_rows, tiles_per_split, may_mask):
    """Accumulate per-class partial sums of (o*t, o, t) over the stream axis.

    Grid: (num_splits, tiles_per_split); axis 1 is the batch reduction.
    acc_ref is a (3, 8, W) sublane-partial f32 accumulator block (one per
    split) kept resident in VMEM across the reduction axis.
    """
    i = pl.program_id(1)

    @pl.when(i == 0)
    def _init():
        acc_ref[...] = jnp.zeros_like(acc_ref)

    o = prob_ref[...].astype(jnp.float32)
    t = tgt_ref[...].astype(jnp.float32)
    rows, width = o.shape
    n8 = rows // 8

    def accumulate(ov, tv):
        # Sublane-partial accumulation: reducing over the vreg-group axis is
        # pure VPU adds; the 8 -> 1 cross-sublane reduce is deferred to the
        # tiny O(C) epilogue in the wrapper.
        acc_ref[0, :, :] += (ov * tv).reshape(n8, 8, width).sum(axis=0)
        acc_ref[1, :, :] += ov.reshape(n8, 8, width).sum(axis=0)
        acc_ref[2, :, :] += tv.reshape(n8, 8, width).sum(axis=0)

    if may_mask:
        s = pl.program_id(0)
        row_start = (s * tiles_per_split + i) * rows
        tail = row_start + rows > valid_rows

        @pl.when(tail)
        def _masked():
            ridx = jax.lax.broadcasted_iota(jnp.int32, (rows, 1), 0) + row_start
            m = ridx < valid_rows
            accumulate(jnp.where(m, o, 0.0), jnp.where(m, t, 0.0))

        @pl.when(jnp.logical_not(tail))
        def _full():
            accumulate(o, t)
    else:
        accumulate(o, t)


def soft_f1_loss(output, target, *, batch_tile=None, num_splits=None):
    """SoftF1Loss forward:
        cost = sum_c (1 - 2*TP_c / (2*TP_c + FN_c + FP_c + 1e-16))

    output, target: (batch, num_classes) arrays (f32 or bf16; accumulation is
    f32 in-kernel, so feed bf16 straight from the producer to halve HBM bytes
    -- do NOT cast here, a wrapper-side astype is an extra un-fused HBM pass).
    num_splits defaults to 2 on v7x (dual TensorCore) and 1 elsewhere.
    """
    assert output.shape == target.shape and output.ndim == 2
    B, C = output.shape
    vmem_bytes, n_tc = _detect_tpu()
    if num_splits is None:
        num_splits = n_tc
    num_splits = max(1, int(num_splits))

    # --- Lane folding: for C not a multiple of 128, fold k batch rows into
    # the lane axis ((B, C) -> (B/k, k*C); contiguous, zero-copy reshape) so
    # streamed blocks are 128-lane dense and stores are unmasked.
    fold = 1
    if C % 128 != 0:
        k = 128 // math.gcd(C, 128)
        if B % k == 0 and B // k >= 8:
            fold = k
    R, W = B // fold, C * fold
    x = output.reshape(R, W) if fold > 1 else output
    y = target.reshape(R, W) if fold > 1 else target

    # --- Tile selection: generation-aware input VMEM budget (double-buffered
    # pipeline for both inputs), targeting 512-1024-row tiles.
    in_itemsize = x.dtype.itemsize + y.dtype.itemsize
    input_budget = max(8 << 20, min(vmem_bytes // 3, 40 << 20))
    if batch_tile is None:
        per_row = 2 * in_itemsize * W                    # 2 buffers per input
        cap = max(8, (input_budget // per_row) // 8 * 8)
        batch_tile = max(8, (min(1024, cap, R) // 8) * 8)
    batch_tile = max(8, _round_up(int(batch_tile), 8))

    tiles_total = pl.cdiv(R, batch_tile)
    if tiles_total < num_splits:
        num_splits = 1
    if tiles_total % num_splits != 0:
        # Bump tile count to a multiple of num_splits and shrink the tile so
        # every grid point maps to an in-bounds block (no phantom tiles).
        t = _round_up(tiles_total, num_splits)
        bt = _round_up(pl.cdiv(R, t), 8)
        if pl.cdiv(R, bt) % num_splits == 0:
            batch_tile, tiles_total = bt, pl.cdiv(R, bt)
        else:
            num_splits = 1
    tiles_per_split = tiles_total // num_splits
    may_mask = tiles_total * batch_tile > R   # only the last tile needs masking

    in_spec = pl.BlockSpec((batch_tile, W),
                           lambda s, i: (s * tiles_per_split + i, 0))
    # Output block index ignores the reduction axis -> the (3, 8, W) block
    # stays VMEM-resident as the accumulator (single merged output).
    out_spec = pl.BlockSpec((None, 3, 8, W), lambda s, i: (s, 0, 0, 0))

    in_flight = 2 * in_itemsize * W * batch_tile
    out_bytes = 2 * 3 * 8 * W * 4
    vmem_limit = int(min(vmem_bytes - (8 << 20), in_flight + out_bytes + (8 << 20)))
    vmem_limit = max(vmem_limit, 16 << 20)

    kernel = functools.partial(
        _soft_f1_partial_kernel,
        valid_rows=R, tiles_per_split=tiles_per_split, may_mask=may_mask)

    parts = pl.pallas_call(
        kernel,
        out_shape=jax.ShapeDtypeStruct((num_splits, 3, 8, W), jnp.float32),
        grid_spec=pltpu.PrefetchScalarGridSpec(
            num_scalar_prefetch=0,
            grid=(num_splits, tiles_per_split),
            in_specs=[in_spec, in_spec],
            out_specs=out_spec,
        ),
        compiler_params=pltpu.CompilerParams(
            dimension_semantics=("parallel", "arbitrary"),
            vmem_limit_bytes=vmem_limit,
        ),
    )(x, y)

    # --- O(C) epilogue: combine splits + sublane partials, unfold lanes, F1.
    sums = parts.sum(axis=(0, 2))                      # (3, W)
    if fold > 1:
        sums = sums.reshape(3, fold, C).sum(axis=1)    # (3, C)
    tp, o_sum, t_sum = sums[0], sums[1], sums[2]
    fp = o_sum - tp            # sum(o*(1-t)) == sum(o) - tp
    fn = t_sum - tp            # sum((1-o)*t) == sum(t) - tp
    soft_f1 = 2.0 * tp / (2.0 * tp + fn + fp + 1e-16)
    return jnp.sum(1.0 - soft_f1)


def soft_f1_loss_ref(output, target):
    output = output.astype(jnp.float32)
    target = target.astype(jnp.float32)
    tp = (output * target).sum(axis=0)
    fp = (output * (1.0 - target)).sum(axis=0)
    fn = ((1.0 - output) * target).sum(axis=0)
    f1 = 2.0 * tp / (2.0 * tp + fn + fp + 1e-16)
    return (1.0 - f1).sum()


if __name__ == "__main__":
    key = jax.random.PRNGKey(0)
    ks = jax.random.split(key, 8)

    # Module spec shapes: (batch_size, class_number) probabilities vs {0,1}.
    B, C = 16, 128
    output = jax.nn.sigmoid(jax.random.normal(ks[0], (B, C), dtype=jnp.float32))
    target = (jax.random.uniform(ks[1], (B, C)) > 0.5).astype(jnp.float32)

    cost = jax.jit(soft_f1_loss)(output, target)
    jax.block_until_ready(cost)
    ref = soft_f1_loss_ref(output, target)
    assert jnp.allclose(cost, ref, rtol=1e-5, atol=1e-4), (cost, ref)

    # In-kernel tail-mask path (batch not a multiple of 8 / of the tile).
    o2 = jax.nn.sigmoid(jax.random.normal(ks[2], (23, 10), dtype=jnp.float32))
    t2 = (jax.random.uniform(ks[3], (23, 10)) > 0.5).astype(jnp.float32)
    c2 = jax.jit(soft_f1_loss)(o2, t2)
    assert jnp.allclose(c2, soft_f1_loss_ref(o2, t2), rtol=1e-5, atol=1e-4), c2

    # Lane-folded path (small C folded into 128-lane-dense blocks) + bf16 target.
    o3 = jax.nn.sigmoid(jax.random.normal(ks[4], (512, 10), dtype=jnp.float32))
    t3 = (jax.random.uniform(ks[5], (512, 10)) > 0.5).astype(jnp.bfloat16)
    c3 = jax.jit(soft_f1_loss)(o3, t3)
    assert jnp.allclose(c3, soft_f1_loss_ref(o3, t3), rtol=1e-5, atol=1e-3), c3

    # Dual-split reduction path (v7x dual-TensorCore style 'parallel' axis).
    o4 = jax.nn.sigmoid(jax.random.normal(ks[6], (64, 128), dtype=jnp.float32))
    t4 = (jax.random.uniform(ks[7], (64, 128)) > 0.5).astype(jnp.float32)
    f4 = jax.jit(functools.partial(soft_f1_loss, num_splits=2, batch_tile=16))
    c4 = f4(o4, t4)
    assert jnp.allclose(c4, soft_f1_loss_ref(o4, t4), rtol=1e-5, atol=1e-4), c4

    jax.block_until_ready((c2, c3, c4))
    print("KERNEL_OK")
</pallas_src>

<mosaic_0001>
module attributes {stable_mosaic.version = 11 : i64} {
  func.func @_soft_f1_partial_kernel(%arg0: i32, %arg1: i32, %arg2: memref<16x128xf32, #tpu.memory_space<vmem>>, %arg3: memref<16x128xf32, #tpu.memory_space<vmem>>, %arg4: memref<1x3x8x128xf32, #tpu.memory_space<vmem>>) attributes {dimension_semantics = [#tpu.dimension_semantics<parallel>, #tpu.dimension_semantics<arbitrary>], iteration_bounds = array<i64: 1, 1>, scalar_prefetch = 0 : i64, scratch_operands = 0 : i64, tpu.core_type = #tpu.core_type<tc>, window_params = [{transform_indices = @transform_0, window_bounds = array<i64: 16, 128>}, {transform_indices = @transform_1, window_bounds = array<i64: 16, 128>}, {transform_indices = @transform_2, window_bounds = array<i64: 1, 3, 8, 128>}]} {
    %c0_i32 = arith.constant 0 : i32
    %0 = arith.cmpi eq, %arg1, %c0_i32 : i32
    %1 = arith.extui %0 : i1 to i32
    %c0_i32_0 = arith.constant 0 : i32
    %2 = arith.cmpi ne, %1, %c0_i32_0 : i32
    scf.if %2 {
      %cst_28 = arith.constant 0.000000e+00 : f32
      %30 = vector.broadcast %cst_28 : f32 to vector<3x8x128xf32>
      %c0_29 = arith.constant 0 : index
      %c0_30 = arith.constant 0 : index
      %c0_31 = arith.constant 0 : index
      %c0_32 = arith.constant 0 : index
      %31 = vector.load %arg4[%c0_29, %c0_30, %c0_31, %c0_32] : memref<1x3x8x128xf32, #tpu.memory_space<vmem>>, vector<1x3x8x128xf32>
      %32 = vector.shape_cast %31 : vector<1x3x8x128xf32> to vector<3x8x128xf32>
      %33 = vector.shape_cast %30 : vector<3x8x128xf32> to vector<1x3x8x128xf32>
      tpu.vector_store %arg4[%c0_29, %c0_30, %c0_31, %c0_32], %33 {strides = array<i32>} : memref<1x3x8x128xf32, #tpu.memory_space<vmem>>, vector<1x3x8x128xf32>,
    } else {
    }
    %c0 = arith.constant 0 : index
    %c0_1 = arith.constant 0 : index
    %3 = vector.load %arg2[%c0, %c0_1] : memref<16x128xf32, #tpu.memory_space<vmem>>, vector<16x128xf32>
    %c0_2 = arith.constant 0 : index
    %c0_3 = arith.constant 0 : index
    %4 = vector.load %arg3[%c0_2, %c0_3] : memref<16x128xf32, #tpu.memory_space<vmem>>, vector<16x128xf32>
    %c0_4 = arith.constant 0 : index
    %c0_5 = arith.constant 0 : index
    %c0_6 = arith.constant 0 : index
    %c0_7 = arith.constant 0 : index
    %5 = vector.load %arg4[%c0_4, %c0_5, %c0_6, %c0_7] : memref<1x3x8x128xf32, #tpu.memory_space<vmem>>, vector<1x1x8x128xf32>
    %6 = vector.shape_cast %5 : vector<1x1x8x128xf32> to vector<8x128xf32>
    %7 = arith.mulf %3, %4 : vector<16x128xf32>
    %8 = vector.shape_cast %7 : vector<16x128xf32> to vector<2x8x128xf32>
    %cst = arith.constant dense<0.000000e+00> : vector<8x128xf32>
    %9 = vector.multi_reduction <add>, %8, %cst [0] : vector<2x8x128xf32> to vector<8x128xf32>
    %10 = arith.addf %6, %9 : vector<8x128xf32>
    %c0_8 = arith.constant 0 : index
    %c0_9 = arith.constant 0 : index
    %c0_10 = arith.constant 0 : index
    %c0_11 = arith.constant 0 : index
    %11 = vector.load %arg4[%c0_8, %c0_9, %c0_10, %c0_11] : memref<1x3x8x128xf32, #tpu.memory_space<vmem>>, vector<1x1x8x128xf32>
    %12 = vector.shape_cast %11 : vector<1x1x8x128xf32> to vector<8x128xf32>
    %13 = vector.shape_cast %10 : vector<8x128xf32> to vector<1x1x8x128xf32>
    tpu.vector_store %arg4[%c0_8, %c0_9, %c0_10, %c0_11], %13 {strides = array<i32>} : memref<1x3x8x128xf32, #tpu.memory_space<vmem>>, vector<1x1x8x128xf32>,
    %c0_12 = arith.constant 0 : index
    %c1 = arith.constant 1 : index
    %c0_13 = arith.constant 0 : index
    %c0_14 = arith.constant 0 : index
    %14 = vector.load %arg4[%c0_12, %c1, %c0_13, %c0_14] : memref<1x3x8x128xf32, #tpu.memory_space<vmem>>, vector<1x1x8x128xf32>
    %15 = vector.shape_cast %14 : vector<1x1x8x128xf32> to vector<8x128xf32>
    %16 = vector.shape_cast %3 : vector<16x128xf32> to vector<2x8x128xf32>
    %cst_15 = arith.constant dense<0.000000e+00> : vector<8x128xf32>
    %17 = vector.multi_reduction <add>, %16, %cst_15 [0] : vector<2x8x128xf32> to vector<8x128xf32>
    %18 = arith.addf %15, %17 : vector<8x128xf32>
    %c0_16 = arith.constant 0 : index
    %c1_17 = arith.constant 1 : index
    %c0_18 = arith.constant 0 : index
    %c0_19 = arith.constant 0 : index
    %19 = vector.load %arg4[%c0_16, %c1_17, %c0_18, %c0_19] : memref<1x3x8x128xf32, #tpu.memory_space<vmem>>, vector<1x1x8x128xf32>
    %20 = vector.shape_cast %19 : vector<1x1x8x128xf32> to vector<8x128xf32>
    %21 = vector.shape_cast %18 : vector<8x128xf32> to vector<1x1x8x128xf32>
    tpu.vector_store %arg4[%c0_16, %c1_17, %c0_18, %c0_19], %21 {strides = array<i32>} : memref<1x3x8x128xf32, #tpu.memory_space<vmem>>, vector<1x1x8x128xf32>,
    %c0_20 = arith.constant 0 : index
    %c2 = arith.constant 2 : index
    %c0_21 = arith.constant 0 : index
    %c0_22 = arith.constant 0 : index
    %22 = vector.load %arg4[%c0_20, %c2, %c0_21, %c0_22] : memref<1x3x8x128xf32, #tpu.memory_space<vmem>>, vector<1x1x8x128xf32>
    %23 = vector.shape_cast %22 : vector<1x1x8x128xf32> to vector<8x128xf32>
    %24 = vector.shape_cast %4 : vector<16x128xf32> to vector<2x8x128xf32>
    %cst_23 = arith.constant dense<0.000000e+00> : vector<8x128xf32>
    %25 = vector.multi_reduction <add>, %24, %cst_23 [0] : vector<2x8x128xf32> to vector<8x128xf32>
    %26 = arith.addf %23, %25 : vector<8x128xf32>
    %c0_24 = arith.constant 0 : index
    %c2_25 = arith.constant 2 : index
    %c0_26 = arith.constant 0 : index
    %c0_27 = arith.constant 0 : index
    %27 = vector.load %arg4[%c0_24, %c2_25, %c0_26, %c0_27] : memref<1x3x8x128xf32, #tpu.memory_space<vmem>>, vector<1x1x8x128xf32>
    %28 = vector.shape_cast %27 : vector<1x1x8x128xf32> to vector<8x128xf32>
    %29 = vector.shape_cast %26 : vector<8x128xf32> to vector<1x1x8x128xf32>
    tpu.vector_store %arg4[%c0_24, %c2_25, %c0_26, %c0_27], %29 {strides = array<i32>} : memref<1x3x8x128xf32, #tpu.memory_space<vmem>>, vector<1x1x8x128xf32>,
    return
  }
  func.func @transform_0(%arg0: i32, %arg1: i32) -> (i32, i32) {
    %c1_i32 = arith.constant 1 : i32
    %0 = arith.muli %arg0, %c1_i32 : i32
    %1 = arith.addi %0, %arg1 : i32
    %c0_i32 = arith.constant 0 : i32
    %c0_i32_0 = arith.constant 0 : i32
    return %1, %c0_i32 : i32, i32
  }
  func.func @transform_1(%arg0: i32, %arg1: i32) -> (i32, i32) {
    %c1_i32 = arith.constant 1 : i32
    %0 = arith.muli %arg0, %c1_i32 : i32
    %1 = arith.addi %0, %arg1 : i32
    %c0_i32 = arith.constant 0 : i32
    %c0_i32_0 = arith.constant 0 : i32
    return %1, %c0_i32 : i32, i32
  }
  func.func @transform_2(%arg0: i32, %arg1: i32) -> (i32, i32, i32, i32) {
    %c0_i32 = arith.constant 0 : i32
    %c0_i32_0 = arith.constant 0 : i32
    %c0_i32_1 = arith.constant 0 : i32
    %c0_i32_2 = arith.constant 0 : i32
    return %arg0, %c0_i32, %c0_i32_0, %c0_i32_1 : i32, i32, i32, i32
  }
}

</mosaic_0001>

<bundles_post_ra>
// kernel: soft_f1_loss.1
= control target key start
LH: loop header
LB: loop body
LE: loop exit
PB: predicated region body
PF: predicated region fallthrough
CT: control target
= control target key end

     0   :  { %7 = vsyncpa [#allocation3], 0  ;;  %s171_s0 = inlined_call_operand.hbm [shape: f32[16,128], index: 0, kind: input, shape index: {}]   ;;  %s172_s1 = inlined_call_operand.hbm [shape: f32[16,128], index: 1, kind: input, shape index: {}]   ;;  %s173_s2 = inlined_call_operand.vmem [shape: f32[1,3,8,128], index: 2, kind: output, shape index: {}]  }
   0x1   :  { %8 = vsyncpa [#allocation5], 0  ;;  %s137_s9 = smov [#allocation2]  }
   0x2   :  { %s18_s10 = sshll.u32 %s137_s9, 4  ;;  %s19_s10 = int_to_ptr.vmem [resolvable:$true] %s18_s10 }
   0x3   :  { %s101_s11 = scalar_lea.vmem %s19_s10, 256  ;;  %p106_p1 = scmp.lt.s32.totalorder %s19_s10, %s19_s10 }
   0x4   :  { %p102_p0 = scmp.ne.s32.totalorder %s19_s10, %s101_s11  ;;  %p107_p2 = scmp.lt.s32.totalorder %s101_s11, %s101_s11 }
   0x6   :  { %p108_p3 = por %p107_p2, %p106_p1 }
   0x8   :  { %p109_p4 = pnand %p108_p3, %p102_p0 }
   0xa   :  { %112 = shalt.err (!%p109_p4)
}
   0xb   :  { %s138_s12 = smov 128   ;;  %s139_s13 = smov 8  }
   0xc   :  { %24 = dma.hbm_to_vmem [thread:$0]  %s171_s0, 256, %s19_s10, [#allocation3], %s138_s12, %s138_s12, %s139_s13  }
   0xd   :  { %s140_s16 = smov [#allocation4]  }
   0xe   :  { %s34_s17 = sshll.u32 %s140_s16, 4  ;;  %s35_s17 = int_to_ptr.vmem [resolvable:$true] %s34_s17 }
   0xf   :  { %s121_s18 = scalar_lea.vmem %s35_s17, 256  ;;  %p126_p6 = scmp.lt.s32.totalorder %s35_s17, %s35_s17 }
  0x10   :  { %p122_p5 = scmp.ne.s32.totalorder %s35_s17, %s121_s18  ;;  %p127_p7 = scmp.lt.s32.totalorder %s121_s18, %s121_s18 }
  0x12   :  { %p128_p8 = por %p127_p7, %p126_p6 }
  0x14   :  { %p129_p9 = pnand %p128_p8, %p122_p5 }
  0x16   :  { %132 = shalt.err (!%p129_p9)
}
  0x17   :  { %40 = dma.hbm_to_vmem [thread:$0]  %s172_s1, 256, %s35_s17, [#allocation5], %s138_s12, %s138_s12, %s139_s13  }
  0x18   :  { %133 = dma.done.wait [#allocation3], 256  }
  0x19   :  { %134 = vsyncadd [#allocation3], 4294967040 }
  0x1a   :  { %135 = dma.done.wait [#allocation5], 256  }
  0x1b   :  { %136 = vsyncadd [#allocation5], 4294967040  ;;  %v58_v0 = vld [vmem:[#allocation2] sm:$0xff]  ;;  %v59_v1 = vld [vmem:[#allocation2 + $0x8] sm:$0xff] }
  0x1c   :  { %v60_v2 = vld [vmem:[#allocation4] sm:$0xff]  ;;  %v61_v3 = vld [vmem:[#allocation4 + $0x8] sm:$0xff]  ;;  %v70_v5 = vadd.f32 %v59_v1, %v58_v0 }
  0x1d   :  { %v63_v4 = vmul.f32 %v60_v2, %v58_v0  ;;  %v64_v6 = vmul.f32 %v61_v3, %v59_v1  ;;  %v75_v7 = vadd.f32 %v61_v3, %v60_v2 }
  0x1e   :  { %85 = vst [vmem:[%s173_s2 + $0x8] sm:$0xff] %v70_v5 }
  0x1f   :  { %v65_v8 = vadd.f32 %v64_v6, %v63_v4  ;;  %87 = vst [vmem:[%s173_s2 + $0x10] sm:$0xff] %v75_v7 }
  0x21   :  { %67 = vst [vmem:[%s173_s2] sm:$0xff] %v65_v8 }
  0x22   :  { %82 = vsyncpa [#allocation3], 1 }
  0x23   :  { %83 = vsyncpa [#allocation5], 1 }

</bundles_post_ra>
